<compile_context>
chip_gen: v7x
topology: tpu7x:2x2x1
jax: 0.10.0
libtpu: 0.0.40
codegen_flags: <defaults>
</compile_context>

<pallas_src>
import jax
import jax.numpy as jnp
from jax.experimental import pallas as pl
from jax.experimental.pallas import tpu as pltpu

NUM_FEATURES = 32  # stand-in for feat_extractor.num_features (resnet50 would be 2048)


def animal_aware_kernel(img_ref, wct_ref, bct_ref, probs_ref,
                        wfeat_ref, wprob_ref, bfc_ref, out_ref):
    """Fused backbone-standin + head for one batch element (grid over B).

    img_ref:   (1, C, HW)  image, lane dim = HW (dense)
    wct_ref:   (F, C)      1x1-conv weight, transposed
    bct_ref:   (F, 1)      1x1-conv bias
    probs_ref: (1, 1, 5)   [animal[:,0], color[:,0:3], maturity[:,0]]
    wfeat_ref: (F, 1)      fc weight rows for the backbone features
    wprob_ref: (1, 5)      fc weight rows for the 5 prob features
    bfc_ref:   (1, 1)      fc bias
    out_ref:   (1, 1, 1)   sigmoid(logit)
    """
    C = img_ref.shape[1]
    F = wct_ref.shape[0]
    HW = img_ref.shape[2]

    img = img_ref[0]          # (C, HW)
    wct = wct_ref[...]        # (F, C)

    # 1x1 conv as C broadcast FMAs on the VPU: acc[f, p] = sum_c wct[f, c] * img[c, p]
    # (K = C = 3 -> MXU would be fill/drain bound; VPU keeps full 8x128 vreg width.)
    acc = jnp.zeros((F, HW), jnp.float32)
    for c in range(C):        # C is small & static -> fully unrolled
        acc = acc + wct[:, c:c + 1] * img[c:c + 1, :]      # (F,1)*(1,HW) -> (F,HW)
    acc = acc + bct_ref[...]                               # bias, lane-broadcast
    feat = jnp.maximum(acc, 0.0)                           # ReLU, (F, HW)

    # Global average pool over spatial positions (lane reduce -> XLU).
    gap = jnp.mean(feat, axis=1, keepdims=True)            # (F, 1)

    # Head: Linear(F+5, 1) fused as elementwise mul + reductions; dropout = identity
    # in eval mode.  concat-then-matmul == gap.w_feat + probs.w_prob.
    feat_logit = jnp.sum(gap * wfeat_ref[...], axis=0, keepdims=True)          # (1,1)
    prob_logit = jnp.sum(probs_ref[0] * wprob_ref[...], axis=1, keepdims=True)  # (1,1)
    logit = feat_logit + prob_logit + bfc_ref[...]                              # (1,1)

    out_ref[...] = jax.nn.sigmoid(logit).reshape(1, 1, 1)  # BCE head


def animal_aware_forward(img_nchw, animal_probs, color_probs, maturity_probs, params):
    """Wrapper: layout glue + pallas_call."""
    wc, bc, wfc, bfc = params
    B, C, H, W = img_nchw.shape
    F = wc.shape[1]
    HW = H * W

    # NCHW -> (B, C, HW): a pure reshape, lane dim becomes HW (multiple of 128).
    img3 = img_nchw.reshape(B, C, HW).astype(jnp.float32)

    # Weight prep on the host (tiny, one-off): transpose conv weight, split fc weight
    # so the kernel never slices across a padded weight tile.
    wc_t = wc.T                                  # (F, C)
    bc_t = bc.reshape(F, 1)                      # (F, 1)
    w_feat = wfc[:F, :]                          # (F, 1)
    w_prob = wfc[F:, :].T                        # (1, 5)

    # The 5 extra scalar features of the non-embedding branch, with a leading
    # singleton so the batch axis is a non-tiled leading grid axis.
    probs3 = jnp.concatenate(
        [animal_probs[:, 0:1], color_probs, maturity_probs[:, 0:1]], axis=1
    ).astype(jnp.float32).reshape(B, 1, 5)

    out = pl.pallas_call(
        animal_aware_kernel,
        out_shape=jax.ShapeDtypeStruct((B, 1, 1), jnp.float32),
        grid=(B,),
        in_specs=[
            pl.BlockSpec((1, C, HW), lambda b: (b, 0, 0)),   # per-batch image block
            pl.BlockSpec((F, C), lambda b: (0, 0)),          # weights: grid-invariant
            pl.BlockSpec((F, 1), lambda b: (0, 0)),
            pl.BlockSpec((1, 1, 5), lambda b: (b, 0, 0)),
            pl.BlockSpec((F, 1), lambda b: (0, 0)),
            pl.BlockSpec((1, 5), lambda b: (0, 0)),
            pl.BlockSpec((1, 1), lambda b: (0, 0)),
        ],
        out_specs=pl.BlockSpec((1, 1, 1), lambda b: (b, 0, 0)),
        compiler_params=pltpu.CompilerParams(
            dimension_semantics=("parallel",)),              # shard B over v7x's 2 TCs
    )(img3, wc_t, bc_t, probs3, w_feat, w_prob, bfc)
    return out.reshape(B, 1)


def init_params(key, in_channels, num_features):
    k1, k2, k3, k4 = jax.random.split(key, 4)
    wc = jax.random.normal(k1, (in_channels, num_features), jnp.float32) * 0.1
    bc = jax.random.normal(k2, (1, num_features), jnp.float32) * 0.01
    wfc = jax.random.normal(k3, (num_features + 5, 1), jnp.float32) * 0.1
    bfc = jax.random.normal(k4, (1, 1), jnp.float32) * 0.01
    return wc, bc, wfc, bfc


def reference_forward(img_nchw, animal_probs, color_probs, maturity_probs, params):
    """Pure-JAX reference of the same forward pass (for a sanity check)."""
    wc, bc, wfc, bfc = params
    B, C, H, W = img_nchw.shape
    img = jnp.transpose(img_nchw, (0, 2, 3, 1)).reshape(B, H * W, C)
    feat = jnp.maximum(img @ wc + bc[None], 0.0)          # (B, HW, F)
    gap = jnp.mean(feat, axis=1)                           # (B, F)
    probs5 = jnp.concatenate(
        [animal_probs[:, 0:1], color_probs, maturity_probs[:, 0:1]], axis=1)
    x = jnp.concatenate([gap, probs5], axis=1)             # (B, F+5)
    return jax.nn.sigmoid(x @ wfc + bfc)                   # (B, 1)


if __name__ == "__main__":
    key = jax.random.PRNGKey(0)
    k_img, k_a, k_c, k_m, k_params = jax.random.split(key, 5)

    B, C, H, W = 2, 3, 16, 16
    img = jax.random.normal(k_img, (B, C, H, W), jnp.float32)

    def to_probs(k, n):
        u = jax.random.uniform(k, (B, n), jnp.float32) + 0.1
        return u / jnp.sum(u, axis=1, keepdims=True)

    animal_probs = to_probs(k_a, 2)
    color_probs = to_probs(k_c, 3)
    maturity_probs = to_probs(k_m, 2)

    params = init_params(k_params, C, NUM_FEATURES)

    out = animal_aware_forward(img, animal_probs, color_probs, maturity_probs, params)
    out = jax.block_until_ready(out)

    ref = reference_forward(img, animal_probs, color_probs, maturity_probs, params)
    assert out.shape == (B, 1)
    assert jnp.allclose(out, ref, atol=1e-4, rtol=1e-4), (out, ref)

    print("KERNEL_OK")
</pallas_src>

<mosaic_0001>
module attributes {stable_mosaic.version = 11 : i64} {
  func.func @animal_aware_kernel(%arg0: i32, %arg1: memref<1x3x256xf32, #tpu.memory_space<vmem>>, %arg2: memref<32x3xf32, #tpu.memory_space<vmem>>, %arg3: memref<32x1xf32, #tpu.memory_space<vmem>>, %arg4: memref<1x1x5xf32, #tpu.memory_space<vmem>>, %arg5: memref<32x1xf32, #tpu.memory_space<vmem>>, %arg6: memref<1x5xf32, #tpu.memory_space<vmem>>, %arg7: memref<1x1xf32, #tpu.memory_space<vmem>>, %arg8: memref<1x1x1xf32, #tpu.memory_space<vmem>>) attributes {dimension_semantics = [#tpu.dimension_semantics<parallel>], iteration_bounds = array<i64: 2>, scalar_prefetch = 0 : i64, scratch_operands = 0 : i64, tpu.core_type = #tpu.core_type<tc>, window_params = [{transform_indices = @transform_0, window_bounds = array<i64: 1, 3, 256>}, {pipeline_mode = #tpu.pipeline_mode<synchronous>, transform_indices = @transform_1, window_bounds = array<i64: 32, 3>}, {pipeline_mode = #tpu.pipeline_mode<synchronous>, transform_indices = @transform_2, window_bounds = array<i64: 32, 1>}, {transform_indices = @transform_3, window_bounds = array<i64: 1, 1, 5>}, {pipeline_mode = #tpu.pipeline_mode<synchronous>, transform_indices = @transform_4, window_bounds = array<i64: 32, 1>}, {pipeline_mode = #tpu.pipeline_mode<synchronous>, transform_indices = @transform_5, window_bounds = array<i64: 1, 5>}, {pipeline_mode = #tpu.pipeline_mode<synchronous>, transform_indices = @transform_6, window_bounds = array<i64: 1, 1>}, {transform_indices = @transform_7, window_bounds = array<i64: 1, 1, 1>}]} {
    %c0 = arith.constant 0 : index
    %c0_0 = arith.constant 0 : index
    %c0_1 = arith.constant 0 : index
    %0 = vector.load %arg1[%c0, %c0_0, %c0_1] : memref<1x3x256xf32, #tpu.memory_space<vmem>>, vector<1x3x256xf32>
    %1 = vector.shape_cast %0 : vector<1x3x256xf32> to vector<3x256xf32>
    %c0_2 = arith.constant 0 : index
    %c0_3 = arith.constant 0 : index
    %2 = vector.load %arg2[%c0_2, %c0_3] : memref<32x3xf32, #tpu.memory_space<vmem>>, vector<32x3xf32>
    %cst = arith.constant 0.000000e+00 : f32
    %3 = vector.broadcast %cst : f32 to vector<32x256xf32>
    %4 = vector.extract_strided_slice %2 {offsets = [0, 0], sizes = [32, 1], strides = [1, 1]} : vector<32x3xf32> to vector<32x1xf32>
    %5 = vector.extract_strided_slice %1 {offsets = [0, 0], sizes = [1, 256], strides = [1, 1]} : vector<3x256xf32> to vector<1x256xf32>
    %6 = vector.broadcast %4 : vector<32x1xf32> to vector<32x256xf32>
    %7 = vector.broadcast %5 : vector<1x256xf32> to vector<32x256xf32>
    %8 = arith.mulf %6, %7 : vector<32x256xf32>
    %9 = arith.addf %3, %8 : vector<32x256xf32>
    %10 = vector.extract_strided_slice %2 {offsets = [0, 1], sizes = [32, 1], strides = [1, 1]} : vector<32x3xf32> to vector<32x1xf32>
    %11 = vector.extract_strided_slice %1 {offsets = [1, 0], sizes = [1, 256], strides = [1, 1]} : vector<3x256xf32> to vector<1x256xf32>
    %12 = vector.broadcast %10 : vector<32x1xf32> to vector<32x256xf32>
    %13 = vector.broadcast %11 : vector<1x256xf32> to vector<32x256xf32>
    %14 = arith.mulf %12, %13 : vector<32x256xf32>
    %15 = arith.addf %9, %14 : vector<32x256xf32>
    %16 = vector.extract_strided_slice %2 {offsets = [0, 2], sizes = [32, 1], strides = [1, 1]} : vector<32x3xf32> to vector<32x1xf32>
    %17 = vector.extract_strided_slice %1 {offsets = [2, 0], sizes = [1, 256], strides = [1, 1]} : vector<3x256xf32> to vector<1x256xf32>
    %18 = vector.broadcast %16 : vector<32x1xf32> to vector<32x256xf32>
    %19 = vector.broadcast %17 : vector<1x256xf32> to vector<32x256xf32>
    %20 = arith.mulf %18, %19 : vector<32x256xf32>
    %21 = arith.addf %15, %20 : vector<32x256xf32>
    %c0_4 = arith.constant 0 : index
    %c0_5 = arith.constant 0 : index
    %22 = vector.load %arg3[%c0_4, %c0_5] : memref<32x1xf32, #tpu.memory_space<vmem>>, vector<32x1xf32>
    %23 = vector.broadcast %22 : vector<32x1xf32> to vector<32x256xf32>
    %24 = arith.addf %21, %23 : vector<32x256xf32>
    %cst_6 = arith.constant 0.000000e+00 : f32
    %25 = vector.broadcast %cst_6 : f32 to vector<32x256xf32>
    %26 = arith.maximumf %24, %25 : vector<32x256xf32>
    %cst_7 = arith.constant dense<0.000000e+00> : vector<32xf32>
    %27 = vector.multi_reduction <add>, %26, %cst_7 [1] : vector<32x256xf32> to vector<32xf32>
    %28 = vector.shape_cast %27 : vector<32xf32> to vector<32x1xf32>
    %cst_8 = arith.constant 2.560000e+02 : f32
    %29 = vector.broadcast %cst_8 : f32 to vector<32x1xf32>
    %30 = arith.divf %28, %29 : vector<32x1xf32>
    %c0_9 = arith.constant 0 : index
    %c0_10 = arith.constant 0 : index
    %31 = vector.load %arg5[%c0_9, %c0_10] : memref<32x1xf32, #tpu.memory_space<vmem>>, vector<32x1xf32>
    %32 = arith.mulf %30, %31 : vector<32x1xf32>
    %cst_11 = arith.constant dense<0.000000e+00> : vector<1xf32>
    %33 = vector.multi_reduction <add>, %32, %cst_11 [0] : vector<32x1xf32> to vector<1xf32>
    %34 = vector.shape_cast %33 : vector<1xf32> to vector<1x1xf32>
    %c0_12 = arith.constant 0 : index
    %c0_13 = arith.constant 0 : index
    %c0_14 = arith.constant 0 : index
    %35 = vector.load %arg4[%c0_12, %c0_13, %c0_14] : memref<1x1x5xf32, #tpu.memory_space<vmem>>, vector<1x1x5xf32>
    %36 = vector.shape_cast %35 : vector<1x1x5xf32> to vector<1x5xf32>
    %c0_15 = arith.constant 0 : index
    %c0_16 = arith.constant 0 : index
    %37 = vector.load %arg6[%c0_15, %c0_16] : memref<1x5xf32, #tpu.memory_space<vmem>>, vector<1x5xf32>
    %38 = arith.mulf %36, %37 : vector<1x5xf32>
    %cst_17 = arith.constant dense<0.000000e+00> : vector<1xf32>
    %39 = vector.multi_reduction <add>, %38, %cst_17 [1] : vector<1x5xf32> to vector<1xf32>
    %40 = vector.shape_cast %39 : vector<1xf32> to vector<1x1xf32>
    %41 = arith.addf %34, %40 : vector<1x1xf32>
    %c0_18 = arith.constant 0 : index
    %c0_19 = arith.constant 0 : index
    %42 = vector.load %arg7[%c0_18, %c0_19] : memref<1x1xf32, #tpu.memory_space<vmem>>, vector<1x1xf32>
    %43 = arith.addf %41, %42 : vector<1x1xf32>
    %44 = arith.negf %43 : vector<1x1xf32>
    %45 = math.exp %44 : vector<1x1xf32>
    %cst_20 = arith.constant 1.000000e+00 : f32
    %46 = vector.broadcast %cst_20 : f32 to vector<1x1xf32>
    %47 = arith.addf %46, %45 : vector<1x1xf32>
    %48 = arith.divf %46, %47 : vector<1x1xf32>
    %49 = vector.shape_cast %48 : vector<1x1xf32> to vector<1x1x1xf32>
    %c0_21 = arith.constant 0 : index
    %c0_22 = arith.constant 0 : index
    %c0_23 = arith.constant 0 : index
    %50 = vector.load %arg8[%c0_21, %c0_22, %c0_23] : memref<1x1x1xf32, #tpu.memory_space<vmem>>, vector<1x1x1xf32>
    tpu.vector_store %arg8[%c0_21, %c0_22, %c0_23], %49 {strides = array<i32>} : memref<1x1x1xf32, #tpu.memory_space<vmem>>, vector<1x1x1xf32>,
    return
  }
  func.func @transform_0(%arg0: i32) -> (i32, i32, i32) {
    %c0_i32 = arith.constant 0 : i32
    %c0_i32_0 = arith.constant 0 : i32
    %c0_i32_1 = arith.constant 0 : i32
    return %arg0, %c0_i32, %c0_i32_0 : i32, i32, i32
  }
  func.func @transform_1(%arg0: i32) -> (i32, i32) {
    %c0_i32 = arith.constant 0 : i32
    %c0_i32_0 = arith.constant 0 : i32
    %c0_i32_1 = arith.constant 0 : i32
    return %c0_i32, %c0_i32_0 : i32, i32
  }
  func.func @transform_2(%arg0: i32) -> (i32, i32) {
    %c0_i32 = arith.constant 0 : i32
    %c0_i32_0 = arith.constant 0 : i32
    %c0_i32_1 = arith.constant 0 : i32
    return %c0_i32, %c0_i32_0 : i32, i32
  }
  func.func @transform_3(%arg0: i32) -> (i32, i32, i32) {
    %c0_i32 = arith.constant 0 : i32
    %c0_i32_0 = arith.constant 0 : i32
    %c0_i32_1 = arith.constant 0 : i32
    return %arg0, %c0_i32, %c0_i32_0 : i32, i32, i32
  }
  func.func @transform_4(%arg0: i32) -> (i32, i32) {
    %c0_i32 = arith.constant 0 : i32
    %c0_i32_0 = arith.constant 0 : i32
    %c0_i32_1 = arith.constant 0 : i32
    return %c0_i32, %c0_i32_0 : i32, i32
  }
  func.func @transform_5(%arg0: i32) -> (i32, i32) {
    %c0_i32 = arith.constant 0 : i32
    %c0_i32_0 = arith.constant 0 : i32
    %c0_i32_1 = arith.constant 0 : i32
    return %c0_i32, %c0_i32_0 : i32, i32
  }
  func.func @transform_6(%arg0: i32) -> (i32, i32) {
    %c0_i32 = arith.constant 0 : i32
    %c0_i32_0 = arith.constant 0 : i32
    %c0_i32_1 = arith.constant 0 : i32
    return %c0_i32, %c0_i32_0 : i32, i32
  }
  func.func @transform_7(%arg0: i32) -> (i32, i32, i32) {
    %c0_i32 = arith.constant 0 : i32
    %c0_i32_0 = arith.constant 0 : i32
    %c0_i32_1 = arith.constant 0 : i32
    return %arg0, %c0_i32, %c0_i32_0 : i32, i32, i32
  }
}

</mosaic_0001>

<bundles_post_ra>
// kernel: tpu_custom_call.1
= control target key start
LH: loop header
LB: loop body
LE: loop exit
PB: predicated region body
PF: predicated region fallthrough
CT: control target
= control target key end

     0   :  { %s692_s26 = smov 0   ;;  %s760_s0 = inlined_call_operand.vmem [shape: f32[2,3,256], index: 0, kind: input, shape index: {}]   ;;  %s761_s1 = inlined_call_operand.vmem [shape: f32[32,3], index: 1, kind: input, shape index: {}]   ;;  %s762_s2 = inlined_call_operand.vmem [shape: f32[32,1], index: 2, kind: input, shape index: {}]   ;;  %s763_s3 = inlined_call_operand.vmem [shape: f32[2,1,5], index: 3, kind: input, shape index: {}]   ;;  %s764_s4 = inlined_call_operand.vmem [shape: f32[32,1], index: 4, kind: input, shape index: {}]   ;;  %s765_s5 = inlined_call_operand.vmem [shape: f32[1,5], index: 5, kind: input, shape index: {}]   ;;  %s766_s6 = inlined_call_operand.<no memory space> [shape: f32[1,1], index: 6, kind: input, shape index: {}]   ;;  %s767_s7 = inlined_call_operand.vmem [shape: f32[2,1,1], index: 7, kind: output, shape index: {}]  }
   0x1   :  { %v12_v0 = vstv %s766_s6 }
   0x2   :  { %13 = vst [vmem:[#allocation2] sm:$0x1] %v12_v0 }
   0x3 LB: > { %s604_s27 = sadd.s32 4294967295, %s644_s26   ;;  %p608_p0 = scmp.ge.s32.totalorder %s644_s26, 1  ;;  %s644_s26 = sphi %s692_s26, %s19_s26  }
   0x4   : > { %p247_p1 = scmp.lt.s32.totalorder %s644_s26, 3 }
   0x6   : > { %p248_p2 = pnand %p608_p0, %p247_p1 }
   0x7   : > { %v292_v1 = vld [vmem:[%s761_s1] sm:$0xff] (!%p248_p2)  ;;  %v646_v2 = vmov (!%p248_p2), 2   ;;  %v647_v3 = vmov (!%p248_p2), 1   ;;  %v293_v4 = vld [vmem:[%s761_s1 + $0x8] sm:$0xff] (!%p248_p2)  ;;  %v295_v5 = vld [vmem:[%s761_s1 + $0x18] sm:$0xff] (!%p248_p2)  ;;  %v648_v7 = vmov (!%p248_p2), 0   ;;  %v317_v12 = vlaneseq (!%p248_p2) }
   0x8   : > { %251 = sbr.rel (%p248_p2) target bundleno = 373 (0x175), region = 48  ;;  %627 = vset.pattern.permute.xlu0 (!%p248_p2), %v646_v2  ;;  %626 = vset.pattern.permute.xlu1 (!%p248_p2), %v647_v3  ;;  %v294_v6 = vld [vmem:[%s761_s1 + $0x10] sm:$0xff] (!%p248_p2)  ;;  %v451_v8 = vld [vmem:[%s762_s2] sm:$0xff] (!%p248_p2)  ;;  %v454_v9 = vld [vmem:[%s762_s2 + $0x18] sm:$0xff] (!%p248_p2)  ;;  %p280_p3 = scmp.lt.s32.totalorder (!%p248_p2), %s604_s27, 1  ;;  %vm533_vm0 = vcmask (!%p248_p2), 32768  }
   0x9   : > { %402 = vperm.xlu0 (!%p248_p2), %627, %v292_v1   ;;  %352 = vperm.xlu1 (!%p248_p2), %626, %v292_v1   ;;  %v452_v10 = vld [vmem:[%s762_s2 + $0x8] sm:$0xff] (!%p248_p2)  ;;  %v453_v11 = vld [vmem:[%s762_s2 + $0x10] sm:$0xff] (!%p248_p2)  ;;  %v318_v13 = vshrl.u32 (!%p248_p2), %v317_v12, 7  ;;  %vm516_vm1 = vcmask (!%p248_p2), 7168   ;;  %vm546_vm2 = vcmask (!%p248_p2), 0  }
   0xb   : > { %v319_v16 = vsub.s32 (!%p248_p2), 0, %v318_v13  ;;  %v323_v17 = vsub.s32 (!%p248_p2), 4, %v318_v13  ;;  %v369_v18 = vsub.s32 (!%p248_p2), 1, %v318_v13  ;;  %v373_v19 = vsub.s32 (!%p248_p2), 5, %v318_v13 }
   0xc   : > { %v419_v22 = vsub.s32 (!%p248_p2), 2, %v318_v13  ;;  %v423_v23 = vsub.s32 (!%p248_p2), 6, %v318_v13 }
   0xd   : > { %630 = vset.pattern.permute.xlu0 (!%p248_p2), %v647_v3  ;;  %356 = vperm.xlu1 (!%p248_p2), %626, %v293_v4  }
   0xe   : > { %364 = vperm.xlu0 (!%p248_p2), %630, %v295_v5  }
   0xf   : > { %s769_s27 = smov (!%p280_p3, %s604_s27), 1 }
  0x10   : > { %s614_s20 = sshll.u32 %s769_s27, 3  ;;  %s287_s28 = scalar_lea.vmem %s763_s3, %s769_s27 }
  0x11   : > { %360 = vperm.xlu1 %626, %v294_v6   ;;  %s284_s23 = scalar_lea.vmem %s760_s0, %s614_s20  ;;  %s290_s17 = scalar_lea.vmem %s767_s7, %s769_s27 }
  0x12   : > { %631 = vset.pattern.permute.xlu0 %v648_v7  ;;  %v291_v20 = vld [vmem:[%s284_s23] sm:$0x77] }
  0x13   : > { %298 = vperm.xlu0 %631, %v292_v1   ;;  %v320_v25 = vrot.slane %v291_v20, %v319_v16  ;;  %v324_v26 = vrot.slane %v291_v20, %v323_v17  ;;  %v370_v27 = vrot.slane %v291_v20, %v369_v18  ;;  %v374_v28 = vrot.slane %v291_v20, %v373_v19 }
  0x14   : > { %v420_v30 = vrot.slane %v291_v20, %v419_v22  ;;  %v424_v31 = vrot.slane %v291_v20, %v423_v23 }
  0x15   : > { %628 = vset.pattern.permute.xlu1 %v646_v2  ;;  %v330_v32 = vrot.slane %v320_v25, %v319_v16  ;;  %v334_v33 = vrot.slane %v324_v26, %v319_v16  ;;  %v380_v35 = vrot.slane %v370_v27, %v369_v18  ;;  %v384_v36 = vrot.slane %v374_v28, %v369_v18 }
  0x16   : > { %406 = vperm.xlu1 %628, %v293_v4   ;;  %v430_v37 = vrot.slane %v420_v30, %v419_v22  ;;  %v434_v38 = vrot.slane %v424_v31, %v419_v22 }
  0x17   : > { %303 = vperm.xlu0 %631, %v293_v4  }
  0x1a   : > { %629 = vset.pattern.permute.xlu1 %v648_v7 }
  0x1b   : > { %308 = vperm.xlu0 %631, %v294_v6   ;;  %313 = vperm.xlu1 %629, %v295_v5  }
  0x1f   : > { %457 = vperm.xlu0 %631, %v451_v8   ;;  %632 = vset.pattern.permute.xlu1 %v646_v2 }
  0x20   : > { %410 = vperm.xlu1 %632, %v294_v6  }
  0x23   : > { %472 = vperm.xlu0 %631, %v454_v9  }
  0x24   : > { %414 = vperm.xlu1 %632, %v295_v5  }
  0x28   : > { %633 = vset.pattern.permute.xlu1 %v648_v7 }
  0x29   : > { %462 = vperm.xlu1 %633, %v452_v10  }
  0x2d   : > { %467 = vperm.xlu1 %633, %v453_v11  }
  0x88   : > { %v353_v14 = vpop.permute.xlu1 %352  ;;  %v403_v15 = vpop.permute.xlu0 %402 }
  0x89   : > { %v385_v43 = vmul.f32 %v380_v35, %v353_v14  ;;  %v386_v44 = vmul.f32 %v384_v36, %v353_v14  ;;  %v435_v45 = vmul.f32 %v430_v37, %v403_v15  ;;  %v436_v46 = vmul.f32 %v434_v38, %v403_v15 }
  0x8c   : > { %v357_v21 = vpop.permute.xlu1 %356 }
  0x8d   : > { %v365_v24 = vpop.permute.xlu0 %364  ;;  %v387_v63 = vmul.f32 %v380_v35, %v357_v21  ;;  %v388_v0 = vmul.f32 %v384_v36, %v357_v21 }
  0x8e   : > { %v391_v59 = vmul.f32 %v380_v35, %v365_v24  ;;  %v392_v60 = vmul.f32 %v384_v36, %v365_v24 }
  0x90   : > { %v361_v29 = vpop.permute.xlu1 %360 }
  0x91   : > { %v389_v15 = vmul.f32 %v380_v35, %v361_v29  ;;  %v390_v16 = vmul.f32 %v384_v36, %v361_v29 }
  0x92   : > { %v299_v34 = vpop.permute.xlu0 %298 }
  0x93   : > { %v335_v39 = vmul.f32 %v330_v32, %v299_v34  ;;  %v336_v40 = vmul.f32 %v334_v33, %v299_v34 }
  0x95   : > { %v407_v41 = vpop.permute.xlu1 %406  ;;  %v393_v47 = vadd.f32 %v385_v43, %v335_v39  ;;  %v394_v48 = vadd.f32 %v386_v44, %v336_v40  ;;  %v531_v43 = vld [vmem:[%s765_s5] sm:$0x1] }
  0x96   : > { %v304_v42 = vpop.permute.xlu0 %303  ;;  %v437_v11 = vmul.f32 %v430_v37, %v407_v41  ;;  %v438_v12 = vmul.f32 %v434_v38, %v407_v41 }
  0x97   : > { %v443_v51 = vadd.f32 %v435_v45, %v393_v47  ;;  %v444_v52 = vadd.f32 %v436_v46, %v394_v48  ;;  %v337_v54 = vmul.f32 %v330_v32, %v304_v42  ;;  %v338_v55 = vmul.f32 %v334_v33, %v304_v42  ;;  %v530_v42 = vld [vmem:[%s287_s28] sm:$0x1] }
  0x98   : > { %v532_v46 = vmul.f32 %v531_v43, %v530_v42 }
  0x99   : > { %v395_v3 = vadd.f32 %v387_v63, %v337_v54  ;;  %v396_v4 = vadd.f32 %v388_v0, %v338_v55 }
  0x9a   : > { %v309_v49 = vpop.permute.xlu0 %308  ;;  %v314_v50 = vpop.permute.xlu1 %313  ;;  %v534_v48 = vsel %vm533_vm0, %v532_v46, 0.0 }
  0x9b   : > { %v341_v61 = vmul.f32 %v330_v32, %v314_v50  ;;  %v342_v62 = vmul.f32 %v334_v33, %v314_v50  ;;  %v339_v13 = vmul.f32 %v330_v32, %v309_v49  ;;  %v340_v14 = vmul.f32 %v334_v33, %v309_v49 }
  0x9c   : > { %v445_v22 = vadd.f32 %v437_v11, %v395_v3  ;;  %v446_v23 = vadd.f32 %v438_v12, %v396_v4 }
  0x9d   : > { %v399_v7 = vadd.f32 %v391_v59, %v341_v61  ;;  %v400_v8 = vadd.f32 %v392_v60, %v342_v62  ;;  %v397_v27 = vadd.f32 %v389_v15, %v339_v13  ;;  %v398_v28 = vadd.f32 %v390_v16, %v340_v14  ;;  %v511_v59 = vld [vmem:[%s764_s4 + $0x18] sm:$0xff]  ;;  %v510_v60 = vld [vmem:[%s764_s4 + $0x10] sm:$0xff]  ;;  %v538_v15 = vld [vmem:[#allocation2] sm:$0x1] }
  0x9e   : > { %v458_v53 = vpop.permute.xlu0 %457 }
  0x9f   : > { %v475_v56 = vadd.f32 %v458_v53, %v443_v51  ;;  %v476_v57 = vadd.f32 %v458_v53, %v444_v52  ;;  %v411_v58 = vpop.permute.xlu1 %410  ;;  %v508_v51 = vld [vmem:[%s764_s4] sm:$0xff]  ;;  %v509_v53 = vld [vmem:[%s764_s4 + $0x8] sm:$0xff] }
  0xa0   : > { %v439_v19 = vmul.f32 %v430_v37, %v411_v58  ;;  %v440_v20 = vmul.f32 %v434_v38, %v411_v58 }
  0xa1   : > { %v483_v1 = vmax.f32 %v475_v56, 0.0  ;;  %v484_v2 = vmax.f32 %v476_v57, 0.0 }
  0xa2   : > { %v473_v21 = vpop.permute.xlu0 %472  ;;  %v447_v35 = vadd.f32 %v439_v19, %v397_v27  ;;  %v448_v36 = vadd.f32 %v440_v20, %v398_v28 }
  0xa3   : > { %v415_v5 = vpop.permute.xlu1 %414  ;;  %v491_v6 = vadd.f32 %v484_v2, %v483_v1 }
  0xa4   : > { %v441_v9 = vmul.f32 %v430_v37, %v415_v5  ;;  %v442_v10 = vmul.f32 %v434_v38, %v415_v5 }
  0xa5   : > { %492 = vadd.xlane.f32.xlu1 %v491_v6 }
  0xa6   : > { %v449_v17 = vadd.f32 %v441_v9, %v399_v7  ;;  %v450_v18 = vadd.f32 %v442_v10, %v400_v8 }
  0xa8   : > { %v463_v24 = vpop.permute.xlu1 %462  ;;  %v481_v25 = vadd.f32 %v473_v21, %v449_v17  ;;  %v482_v26 = vadd.f32 %v473_v21, %v450_v18 }
  0xa9   : > { %v477_v30 = vadd.f32 %v463_v24, %v445_v22  ;;  %v478_v31 = vadd.f32 %v463_v24, %v446_v23 }
  0xaa   : > { %v489_v32 = vmax.f32 %v481_v25, 0.0  ;;  %v490_v33 = vmax.f32 %v482_v26, 0.0 }
  0xab   : > { %v485_v29 = vmax.f32 %v477_v30, 0.0  ;;  %v486_v34 = vmax.f32 %v478_v31, 0.0 }
  0xac   : > { %v468_v37 = vpop.permute.xlu1 %467  ;;  %v500_v38 = vadd.f32 %v490_v33, %v489_v32 }
  0xad   : > { %v479_v39 = vadd.f32 %v468_v37, %v447_v35  ;;  %v480_v40 = vadd.f32 %v468_v37, %v448_v36  ;;  %v494_v41 = vadd.f32 %v486_v34, %v485_v29 }
  0xae   : > { %501 = vadd.xlane.f32.xlu1 %v500_v38 }
  0xaf   : > { %v487_v44 = vmax.f32 %v479_v39, 0.0  ;;  %v488_v45 = vmax.f32 %v480_v40, 0.0  ;;  %495 = vadd.xlane.f32.xlu0 %v494_v41 }
  0xb1   : > { %v497_v47 = vadd.f32 %v488_v45, %v487_v44 }
  0xb3   : > { %498 = vadd.xlane.f32.xlu0 %v497_v47 }
  0xb7   : > { %535 = vadd.xlane.f32.xlu0 %v534_v48 }
 0x132   : > { %v493_v49 = vpop.xlane.xlu1 %492 }
 0x133   : > { %v504_v50 = vmul.f32 0.00390625, %v493_v49 }
 0x135   : > { %v512_v56 = vmul.f32 %v508_v51, %v504_v50 }
 0x137   : > { %v517_v0 = vsel %vm516_vm1, %v512_v56, 0.0 }
 0x13b   : > { %v502_v52 = vpop.xlane.xlu1 %501 }
 0x13c   : > { %v496_v54 = vpop.xlane.xlu0 %495  ;;  %v507_v57 = vmul.f32 0.00390625, %v502_v52 }
 0x13d   : > { %v505_v55 = vmul.f32 0.00390625, %v496_v54 }
 0x13e   : > { %v515_v1 = vmul.f32 %v511_v59, %v507_v57 }
 0x13f   : > { %v513_v58 = vmul.f32 %v509_v53, %v505_v55 }
 0x140   : > { %v499_v61 = vpop.xlane.xlu0 %498  ;;  %v522_v6 = vsel %vm516_vm1, %v515_v1, 0.0 }
 0x141   : > { %v518_v62 = vsel %vm516_vm1, %v513_v58, 0.0  ;;  %v506_v63 = vmul.f32 0.00390625, %v499_v61 }
 0x142   : > { %v519_v3 = vadd.f32 %v518_v62, %v517_v0 }
 0x143   : > { %v514_v2 = vmul.f32 %v510_v60, %v506_v63 }
 0x144   : > { %v536_v13 = vpop.xlane.xlu0 %535 }
 0x145   : > { %v520_v4 = vsel %vm516_vm1, %v514_v2, 0.0 }
 0x146   : > { %v521_v5 = vadd.f32 %v520_v4, %v519_v3 }
 0x148   : > { %v523_v7 = vadd.f32 %v522_v6, %v521_v5 }
 0x14a   : > { %v524_v8 = vrot.slane %v523_v7, 4 }
 0x14c   : > { %v525_v9 = vadd.f32 %v524_v8, %v523_v7 }
 0x14e   : > { %v526_v10 = vrot.slane %v525_v9, 2 }
 0x150   : > { %v527_v11 = vadd.f32 %v526_v10, %v525_v9 }
 0x152   : > { %v528_v12 = vrot.slane %v527_v11, 1 }
 0x154   : > { %v529_v14 = vadd.f32 %v528_v12, %v527_v11 }
 0x156   : > { %v537_v16 = vadd.f32 %v536_v13, %v529_v14 }
 0x158   : > { %v539_v17 = vadd.f32 %v538_v15, %v537_v16 }
 0x15a   : > { %v611_v18 = vmul.f32 -1.442695, %v539_v17 }
 0x15c   : > { %634 = vpow2.f32 %v611_v18 }
 0x166   : > { %v635_v19 = vpop.eup %634 }
 0x167   : > { %v543_v20 = vadd.f32 1.0, %v635_v19 }
 0x169   : > { %636 = vrcp.f32 %v543_v20 }
 0x173   : > { %v637_v21 = vpop.eup %636 }
 0x174   : > { %547 = vst.msk [vmem:[%s290_s17] sm:$0x1] %vm546_vm2, %v637_v21 }
 0x175 PF: > { %s19_s26 = sadd.s32 1, %s644_s26  }
 0x176   : > { %p16_p4 = scmp.ge.s32.totalorder %s19_s26, 4  }
 0x178   :  { %18 = sbr.rel (!%p16_p4) target bundleno = 3 (0x3), region = 81 }

</bundles_post_ra>
